<compile_context>
chip_gen: v5e
topology: v5e:2x2
jax: 0.10.0
libtpu: 0.0.40
codegen_flags: <defaults>
</compile_context>

<pallas_src>
import jax
import jax.numpy as jnp
from jax.experimental import pallas as pl
from jax.experimental.pallas import tpu as pltpu


def _dma_copy_kernel(x_hbm, o_hbm, sem):
    # Single HBM->HBM DMA: no VMEM staging, no vld/vst loop, zero VMEM usage.
    cp = pltpu.make_async_copy(x_hbm, o_hbm, sem)
    cp.start()
    cp.wait()


def view_collapse(a: jax.Array, b, c) -> jax.Array:
    """Equivalent of `a.view(a.size(0), int(b), int(c), a.size(3), 384)`."""
    d0, d1, d2, d3, d4, d5 = a.shape
    # TODO(synk): b/c are runtime int64 scalar tensors in the torch module; JAX
    # shapes must be static, so int(b)/int(c) forces a device->host sync and
    # this wrapper cannot be called with traced scalars (same constraint that
    # torch's int() scalar extraction imposes when shapes must be concrete).
    bi, ci = int(b), int(c)
    assert d4 * d5 == 384, "trailing dims must collapse to 384"
    assert bi * ci == d1 * d2, "view must preserve the element count"
    out_shape = (d0, bi, ci, d3, 384)

    # Row-major collapse of the trailing dims; metadata for the view itself.
    a_collapsed = a.reshape(out_shape)
    nbytes = a.size * a.dtype.itemsize

    return pl.pallas_call(
        _dma_copy_kernel,
        out_shape=jax.ShapeDtypeStruct(out_shape, a.dtype),
        in_specs=[pl.BlockSpec(memory_space=pl.ANY)],
        out_specs=pl.BlockSpec(memory_space=pl.ANY),
        scratch_shapes=[pltpu.SemaphoreType.DMA(())],
        cost_estimate=pl.CostEstimate(
            flops=0, transcendentals=0, bytes_accessed=2 * nbytes),
    )(a_collapsed)


if __name__ == "__main__":
    key = jax.random.PRNGKey(0)
    # Shapes match the torch-mlir e2e test case for this module.
    a = jax.random.normal(key, (2, 3, 5, 4, 12, 32), dtype=jnp.float32)
    b = jnp.asarray(3)  # stands in for the int64 scalar tensor `b`
    c = jnp.asarray(5)  # stands in for the int64 scalar tensor `c`

    out = view_collapse(a, b, c)
    jax.block_until_ready(out)

    # Pure-JAX reference of torch.view semantics (contiguous, row-major).
    ref = jnp.reshape(a, (a.shape[0], int(b), int(c), a.shape[3], 384))
    assert out.shape == (2, 3, 5, 4, 384)
    assert out.dtype == jnp.float32
    assert bool(jnp.array_equal(out, ref))

    print("KERNEL_OK")
</pallas_src>

<mosaic_0001>
module attributes {stable_mosaic.version = 11 : i64} {
  func.func @_dma_copy_kernel(%arg0: memref<2x3x5x4x384xf32, #tpu.memory_space<any>>, %arg1: memref<2x3x5x4x384xf32, #tpu.memory_space<any>>, %arg2: memref<!tpu.dma_semaphore, #tpu.memory_space<semaphore_mem>>) attributes {dimension_semantics = [], scalar_prefetch = 0 : i64, scratch_operands = 1 : i64, tpu.core_type = #tpu.core_type<tc>} {
    tpu.enqueue_dma source(%arg0 : memref<2x3x5x4x384xf32, #tpu.memory_space<any>>) target(%arg1 : memref<2x3x5x4x384xf32, #tpu.memory_space<any>>) target_semaphore(%arg2 : memref<!tpu.dma_semaphore, #tpu.memory_space<semaphore_mem>>)
    tpu.wait_dma2 semaphore(%arg2 : memref<!tpu.dma_semaphore, #tpu.memory_space<semaphore_mem>>) src(%arg0 : memref<2x3x5x4x384xf32, #tpu.memory_space<any>>) dst(%arg1 : memref<2x3x5x4x384xf32, #tpu.memory_space<any>>)
    return
  }
}

</mosaic_0001>

<bundles_post_ra>
// kernel: tpu_custom_call.1
= control target key start
LH: loop header
LB: loop body
LE: loop exit
PB: predicated region body
PF: predicated region fallthrough
CT: control target
= control target key end

     0   :  { %s36_s12 = smov [#allocation2]   ;;  %s37_s13 = smov [#allocation3]   ;;  %s55_s0 = inlined_call_operand.hbm [shape: f32[2,3,5,4,384], index: 0, kind: input, shape index: {}]   ;;  %s56_s1 = inlined_call_operand.hbm [shape: f32[2,3,5,4,384], index: 1, kind: output, shape index: {}]  }
   0x1   :  { %s10_s8 = sshll.u32 %s55_s0, 4  ;;  %s12_s11 = sshll.u32 %s56_s1, 4  ;;  %s11_s8 = int_to_ptr.hbm [resolvable:$true] %s10_s8  ;;  %s13_s11 = int_to_ptr.hbm [resolvable:$true] %s12_s11 }
   0x2   :  { %s38_s14 = smov 0  }
   0x3   :  { %16 = dma.general %s11_s8, 5760, %s13_s11, %s36_s12, %s37_s13, [#allocation4], %s38_s14, 0  }
   0x4   :  { %34 = dma.done.wait [#allocation2], 5760 }
   0x5   :  { %35 = vsyncadd [#allocation2], 4294961536 }
   0x6   :  { %24 = vsyncmov [#allocation2] }
   0x9   :  { %s25_s15 = vpop.sfrf %24 }
   0xa   :  { %p30_p0 = scmp.ne.s32.totalorder %s25_s15, 0 }
   0xc   :  { %29 = shalt.err (%p30_p0)  }

</bundles_post_ra>
